<compile_context>
chip_gen: v7x
topology: tpu7x:2x2x1
jax: 0.10.0
libtpu: 0.0.40
codegen_flags: <defaults>
</compile_context>

<pallas_src>
import functools

import jax
import jax.numpy as jnp
from jax.experimental import pallas as pl
from jax.experimental.pallas import tpu as pltpu

LOG_STD_MIN = -20.0
LOG_STD_MAX = 2.0

_LANE = 128
_MAX_BATCH_TILE = 1024


def _round_up(x, m):
    return -(-x // m) * m


def actor_kernel(action_size,
                 state_ref, w1_ref, b1_ref, w2_ref, b2_ref, wh_ref, bh_ref,
                 mu_ref, log_std_ref):
    A = action_size
    x = state_ref[...]

    # fc1 + relu   (hidden padded to a full 128-lane tile)
    h = jnp.dot(x, w1_ref[...], preferred_element_type=jnp.float32) + b1_ref[...]
    h = jnp.maximum(h, 0.0)

    # fc2 + relu
    h = jnp.dot(h, w2_ref[...], preferred_element_type=jnp.float32) + b2_ref[...]
    h = jnp.maximum(h, 0.0)

    # fused heads (128-wide matmul for the MXU): columns [0, A) = mu,
    # [A, 2A) = log_std, rest = zero pad.  Only the useful columns are stored.
    y = jnp.dot(h, wh_ref[...], preferred_element_type=jnp.float32) + bh_ref[...]

    mu_ref[...] = y[:, :A].astype(mu_ref.dtype)
    log_std_ref[...] = jnp.clip(y[:, A:2 * A],
                                LOG_STD_MIN, LOG_STD_MAX).astype(log_std_ref.dtype)


def pack_actor_params(params):
    """One-time packing: fuse the two heads and zero-pad to lane-dense widths."""
    w1, b1, w2, b2, wmu, bmu, wls, bls = params
    S, H = w1.shape
    A = wmu.shape[1]

    Hp = _round_up(H, _LANE)          # padded hidden width
    OP = _round_up(2 * A, _LANE)      # padded fused-head matmul width

    w1p = jnp.zeros((S, Hp), jnp.float32).at[:, :H].set(w1)
    b1p = jnp.zeros((1, Hp), jnp.float32).at[:, :H].set(b1)
    w2p = jnp.zeros((Hp, Hp), jnp.float32).at[:H, :H].set(w2)
    b2p = jnp.zeros((1, Hp), jnp.float32).at[:, :H].set(b2)
    whp = (jnp.zeros((Hp, OP), jnp.float32)
           .at[:H, :A].set(wmu)
           .at[:H, A:2 * A].set(wls))
    bhp = (jnp.zeros((1, OP), jnp.float32)
           .at[:, :A].set(bmu)
           .at[:, A:2 * A].set(bls))
    return (w1p, b1p, w2p, b2p, whp, bhp), A


def actor_forward(state, packed_params, action_size):
    """Pallas implementation of Actor.forward: returns (mu, log_std)."""
    w1, b1, w2, b2, wh, bh = packed_params
    B, S = state.shape
    Hp = w1.shape[1]
    OP = wh.shape[1]
    A = action_size

    # Batch tiling: one full block for small batches; otherwise an even number
    # of >= 2 grid steps (multiple-of-8 rows) so v7x can use both TensorCores.
    if B <= _MAX_BATCH_TILE:
        TB = B
    else:
        n_steps = pl.cdiv(B, _MAX_BATCH_TILE)
        if n_steps % 2:
            n_steps += 1
        TB = _round_up(pl.cdiv(B, n_steps), 8)
    grid = (pl.cdiv(B, TB),)

    kernel = functools.partial(actor_kernel, A)

    # Weights/biases: full-array blocks with grid-invariant index_maps, so they
    # are DMA'd once and stay VMEM-resident across batch tiles.
    const_spec = lambda a: pl.BlockSpec(a.shape, lambda i: (0, 0))

    flops = 2 * B * (S * Hp + Hp * Hp + Hp * OP)
    bytes_accessed = 4 * (B * S + 2 * B * A
                          + S * Hp + Hp + Hp * Hp + Hp + Hp * OP + OP)
    cost = pl.CostEstimate(flops=flops, transcendentals=0,
                           bytes_accessed=bytes_accessed)

    mu, log_std = pl.pallas_call(
        kernel,
        out_shape=(jax.ShapeDtypeStruct((B, A), jnp.float32),
                   jax.ShapeDtypeStruct((B, A), jnp.float32)),
        grid=grid,
        in_specs=[
            pl.BlockSpec((TB, S), lambda i: (i, 0)),   # state, tiled over batch
            const_spec(w1), const_spec(b1),
            const_spec(w2), const_spec(b2),
            const_spec(wh), const_spec(bh),
        ],
        out_specs=(pl.BlockSpec((TB, A), lambda i: (i, 0)),
                   pl.BlockSpec((TB, A), lambda i: (i, 0))),
        compiler_params=pltpu.CompilerParams(
            dimension_semantics=("parallel",)),
        cost_estimate=cost,
    )(state, w1, b1, w2, b2, wh, bh)
    return mu, log_std


def init_actor_params(key, state_size, action_size, hidden_size=32):
    """Deterministic init mimicking torch.nn.Linear default U(-1/sqrt(fan_in), 1/sqrt(fan_in))."""
    def linear(key, fan_in, fan_out):
        kw, kb = jax.random.split(key)
        bound = 1.0 / jnp.sqrt(float(fan_in))
        w = jax.random.uniform(kw, (fan_in, fan_out), jnp.float32, -bound, bound)
        b = jax.random.uniform(kb, (1, fan_out), jnp.float32, -bound, bound)
        return w, b

    k1, k2, k3, k4 = jax.random.split(key, 4)
    w1, b1 = linear(k1, state_size, hidden_size)
    w2, b2 = linear(k2, hidden_size, hidden_size)
    wmu, bmu = linear(k3, hidden_size, action_size)
    wls, bls = linear(k4, hidden_size, action_size)
    return (w1, b1, w2, b2, wmu, bmu, wls, bls)


if __name__ == "__main__":
    key = jax.random.PRNGKey(0)
    k_params, k_state = jax.random.split(key)

    batch = 8
    state_size = 8
    action_size = 4
    hidden_size = 32

    raw_params = init_actor_params(k_params, state_size, action_size, hidden_size)
    packed_params, A = pack_actor_params(raw_params)
    state = jax.random.normal(k_state, (batch, state_size), dtype=jnp.float32)

    mu, log_std = actor_forward(state, packed_params, A)
    jax.block_until_ready((mu, log_std))

    # Pure-JAX reference check (same math, unpadded, no Pallas).
    w1, b1, w2, b2, wmu, bmu, wls, bls = raw_params
    h = jnp.maximum(state @ w1 + b1, 0.0)
    h = jnp.maximum(h @ w2 + b2, 0.0)
    mu_ref = h @ wmu + bmu
    ls_ref = jnp.clip(h @ wls + bls, LOG_STD_MIN, LOG_STD_MAX)

    assert mu.shape == (batch, action_size) and log_std.shape == (batch, action_size)
    assert jnp.allclose(mu, mu_ref, atol=1e-5), "mu mismatch"
    assert jnp.allclose(log_std, ls_ref, atol=1e-5), "log_std mismatch"

    print("KERNEL_OK")
</pallas_src>

<mosaic_0001>
module attributes {stable_mosaic.version = 11 : i64} {
  func.func @actor_kernel(%arg0: i32, %arg1: memref<8x8xf32, #tpu.memory_space<vmem>>, %arg2: memref<8x128xf32, #tpu.memory_space<vmem>>, %arg3: memref<1x128xf32, #tpu.memory_space<vmem>>, %arg4: memref<128x128xf32, #tpu.memory_space<vmem>>, %arg5: memref<1x128xf32, #tpu.memory_space<vmem>>, %arg6: memref<128x128xf32, #tpu.memory_space<vmem>>, %arg7: memref<1x128xf32, #tpu.memory_space<vmem>>, %arg8: memref<8x4xf32, #tpu.memory_space<vmem>>, %arg9: memref<8x4xf32, #tpu.memory_space<vmem>>) attributes {dimension_semantics = [#tpu.dimension_semantics<parallel>], iteration_bounds = array<i64: 1>, scalar_prefetch = 0 : i64, scratch_operands = 0 : i64, tpu.core_type = #tpu.core_type<tc>, window_params = [{transform_indices = @transform_0, window_bounds = array<i64: 8, 8>}, {pipeline_mode = #tpu.pipeline_mode<synchronous>, transform_indices = @transform_1, window_bounds = array<i64: 8, 128>}, {pipeline_mode = #tpu.pipeline_mode<synchronous>, transform_indices = @transform_2, window_bounds = array<i64: 1, 128>}, {pipeline_mode = #tpu.pipeline_mode<synchronous>, transform_indices = @transform_3, window_bounds = array<i64: 128, 128>}, {pipeline_mode = #tpu.pipeline_mode<synchronous>, transform_indices = @transform_4, window_bounds = array<i64: 1, 128>}, {pipeline_mode = #tpu.pipeline_mode<synchronous>, transform_indices = @transform_5, window_bounds = array<i64: 128, 128>}, {pipeline_mode = #tpu.pipeline_mode<synchronous>, transform_indices = @transform_6, window_bounds = array<i64: 1, 128>}, {transform_indices = @transform_7, window_bounds = array<i64: 8, 4>}, {transform_indices = @transform_8, window_bounds = array<i64: 8, 4>}]} {
    %c0 = arith.constant 0 : index
    %c0_0 = arith.constant 0 : index
    %0 = vector.load %arg1[%c0, %c0_0] : memref<8x8xf32, #tpu.memory_space<vmem>>, vector<8x8xf32>
    %c0_1 = arith.constant 0 : index
    %c0_2 = arith.constant 0 : index
    %1 = vector.load %arg2[%c0_1, %c0_2] : memref<8x128xf32, #tpu.memory_space<vmem>>, vector<8x128xf32>
    %cst = arith.constant dense<0.000000e+00> : vector<8x128xf32>
    %2 = tpu.matmul %0, %1, %cst {dimension_numbers = #tpu.dot_dimension_numbers<[1], [0], [0], [1], [0, 0, 1, 1], [], []>} : vector<8x8xf32>, vector<8x128xf32>, vector<8x128xf32> -> vector<8x128xf32>
    %c0_3 = arith.constant 0 : index
    %c0_4 = arith.constant 0 : index
    %3 = vector.load %arg3[%c0_3, %c0_4] : memref<1x128xf32, #tpu.memory_space<vmem>>, vector<1x128xf32>
    %4 = vector.broadcast %3 : vector<1x128xf32> to vector<8x128xf32>
    %5 = arith.addf %2, %4 : vector<8x128xf32>
    %cst_5 = arith.constant 0.000000e+00 : f32
    %6 = vector.broadcast %cst_5 : f32 to vector<8x128xf32>
    %7 = arith.maximumf %5, %6 : vector<8x128xf32>
    %c0_6 = arith.constant 0 : index
    %c0_7 = arith.constant 0 : index
    %8 = vector.load %arg4[%c0_6, %c0_7] : memref<128x128xf32, #tpu.memory_space<vmem>>, vector<128x128xf32>
    %cst_8 = arith.constant dense<0.000000e+00> : vector<8x128xf32>
    %9 = tpu.matmul %7, %8, %cst_8 {dimension_numbers = #tpu.dot_dimension_numbers<[1], [0], [0], [1], [0, 0, 1, 1], [], []>} : vector<8x128xf32>, vector<128x128xf32>, vector<8x128xf32> -> vector<8x128xf32>
    %c0_9 = arith.constant 0 : index
    %c0_10 = arith.constant 0 : index
    %10 = vector.load %arg5[%c0_9, %c0_10] : memref<1x128xf32, #tpu.memory_space<vmem>>, vector<1x128xf32>
    %11 = vector.broadcast %10 : vector<1x128xf32> to vector<8x128xf32>
    %12 = arith.addf %9, %11 : vector<8x128xf32>
    %cst_11 = arith.constant 0.000000e+00 : f32
    %13 = vector.broadcast %cst_11 : f32 to vector<8x128xf32>
    %14 = arith.maximumf %12, %13 : vector<8x128xf32>
    %c0_12 = arith.constant 0 : index
    %c0_13 = arith.constant 0 : index
    %15 = vector.load %arg6[%c0_12, %c0_13] : memref<128x128xf32, #tpu.memory_space<vmem>>, vector<128x128xf32>
    %cst_14 = arith.constant dense<0.000000e+00> : vector<8x128xf32>
    %16 = tpu.matmul %14, %15, %cst_14 {dimension_numbers = #tpu.dot_dimension_numbers<[1], [0], [0], [1], [0, 0, 1, 1], [], []>} : vector<8x128xf32>, vector<128x128xf32>, vector<8x128xf32> -> vector<8x128xf32>
    %c0_15 = arith.constant 0 : index
    %c0_16 = arith.constant 0 : index
    %17 = vector.load %arg7[%c0_15, %c0_16] : memref<1x128xf32, #tpu.memory_space<vmem>>, vector<1x128xf32>
    %18 = vector.broadcast %17 : vector<1x128xf32> to vector<8x128xf32>
    %19 = arith.addf %16, %18 : vector<8x128xf32>
    %20 = vector.extract_strided_slice %19 {offsets = [0, 0], sizes = [8, 4], strides = [1, 1]} : vector<8x128xf32> to vector<8x4xf32>
    %c0_17 = arith.constant 0 : index
    %c0_18 = arith.constant 0 : index
    %21 = vector.load %arg8[%c0_17, %c0_18] : memref<8x4xf32, #tpu.memory_space<vmem>>, vector<8x4xf32>
    tpu.vector_store %arg8[%c0_17, %c0_18], %20 {strides = array<i32>} : memref<8x4xf32, #tpu.memory_space<vmem>>, vector<8x4xf32>,
    %22 = vector.extract_strided_slice %19 {offsets = [0, 4], sizes = [8, 4], strides = [1, 1]} : vector<8x128xf32> to vector<8x4xf32>
    %cst_19 = arith.constant -2.000000e+01 : f32
    %cst_20 = arith.constant 2.000000e+00 : f32
    %23 = vector.broadcast %cst_19 : f32 to vector<8x4xf32>
    %24 = arith.maximumf %23, %22 : vector<8x4xf32>
    %25 = vector.broadcast %cst_20 : f32 to vector<8x4xf32>
    %26 = arith.minimumf %25, %24 : vector<8x4xf32>
    %c0_21 = arith.constant 0 : index
    %c0_22 = arith.constant 0 : index
    %27 = vector.load %arg9[%c0_21, %c0_22] : memref<8x4xf32, #tpu.memory_space<vmem>>, vector<8x4xf32>
    tpu.vector_store %arg9[%c0_21, %c0_22], %26 {strides = array<i32>} : memref<8x4xf32, #tpu.memory_space<vmem>>, vector<8x4xf32>,
    return
  }
  func.func @transform_0(%arg0: i32) -> (i32, i32) {
    %c0_i32 = arith.constant 0 : i32
    %c0_i32_0 = arith.constant 0 : i32
    return %arg0, %c0_i32 : i32, i32
  }
  func.func @transform_1(%arg0: i32) -> (i32, i32) {
    %c0_i32 = arith.constant 0 : i32
    %c0_i32_0 = arith.constant 0 : i32
    %c0_i32_1 = arith.constant 0 : i32
    return %c0_i32, %c0_i32_0 : i32, i32
  }
  func.func @transform_2(%arg0: i32) -> (i32, i32) {
    %c0_i32 = arith.constant 0 : i32
    %c0_i32_0 = arith.constant 0 : i32
    %c0_i32_1 = arith.constant 0 : i32
    return %c0_i32, %c0_i32_0 : i32, i32
  }
  func.func @transform_3(%arg0: i32) -> (i32, i32) {
    %c0_i32 = arith.constant 0 : i32
    %c0_i32_0 = arith.constant 0 : i32
    %c0_i32_1 = arith.constant 0 : i32
    return %c0_i32, %c0_i32_0 : i32, i32
  }
  func.func @transform_4(%arg0: i32) -> (i32, i32) {
    %c0_i32 = arith.constant 0 : i32
    %c0_i32_0 = arith.constant 0 : i32
    %c0_i32_1 = arith.constant 0 : i32
    return %c0_i32, %c0_i32_0 : i32, i32
  }
  func.func @transform_5(%arg0: i32) -> (i32, i32) {
    %c0_i32 = arith.constant 0 : i32
    %c0_i32_0 = arith.constant 0 : i32
    %c0_i32_1 = arith.constant 0 : i32
    return %c0_i32, %c0_i32_0 : i32, i32
  }
  func.func @transform_6(%arg0: i32) -> (i32, i32) {
    %c0_i32 = arith.constant 0 : i32
    %c0_i32_0 = arith.constant 0 : i32
    %c0_i32_1 = arith.constant 0 : i32
    return %c0_i32, %c0_i32_0 : i32, i32
  }
  func.func @transform_7(%arg0: i32) -> (i32, i32) {
    %c0_i32 = arith.constant 0 : i32
    %c0_i32_0 = arith.constant 0 : i32
    return %arg0, %c0_i32 : i32, i32
  }
  func.func @transform_8(%arg0: i32) -> (i32, i32) {
    %c0_i32 = arith.constant 0 : i32
    %c0_i32_0 = arith.constant 0 : i32
    return %arg0, %c0_i32 : i32, i32
  }
}

</mosaic_0001>

<bundles_post_ra>
// kernel: tpu_custom_call.1
= control target key start
LH: loop header
LB: loop body
LE: loop exit
PB: predicated region body
PF: predicated region fallthrough
CT: control target
= control target key end

     0   :  { %14 = vsyncpa [#allocation3], 0  ;;  %s774_s0 = inlined_call_operand.hbm [shape: f32[8,8], index: 0, kind: input, shape index: {}]   ;;  %s775_s1 = inlined_call_operand.hbm [shape: f32[8,128], index: 1, kind: input, shape index: {}]   ;;  %s776_s2 = inlined_call_operand.vmem [shape: f32[1,128], index: 2, kind: input, shape index: {}]   ;;  %s777_s3 = inlined_call_operand.hbm [shape: f32[128,128], index: 3, kind: input, shape index: {}]   ;;  %s778_s4 = inlined_call_operand.vmem [shape: f32[1,128], index: 4, kind: input, shape index: {}]   ;;  %s779_s5 = inlined_call_operand.hbm [shape: f32[128,128], index: 5, kind: input, shape index: {}]   ;;  %s780_s6 = inlined_call_operand.vmem [shape: f32[1,128], index: 6, kind: input, shape index: {}]   ;;  %s781_s7 = inlined_call_operand.vmem [shape: f32[8,4], index: 7, kind: output, shape index: {0}]   ;;  %s782_s8 = inlined_call_operand.vmem [shape: f32[8,4], index: 8, kind: output, shape index: {1}]  }
   0x1   :  { %15 = vsyncpa [#allocation5], 0 }
   0x2   :  { %16 = vsyncpa [#allocation8], 0  ;;  %s637_s27 = smov [#allocation4]   ;;  %s638_s29 = smov [#allocation2]  }
   0x3   :  { %s33_s28 = sshll.u32 %s637_s27, 4  ;;  %s23_s30 = sshll.u32 %s638_s29, 4  ;;  %s34_s28 = int_to_ptr.vmem [resolvable:$true] %s33_s28  ;;  %s24_s30 = int_to_ptr.vmem [resolvable:$true] %s23_s30 }
   0x4   :  { %s543_s11 = scalar_lea.hbm %s775_s1, 128 }
   0x5   :  { %p544_p0 = scmp.ne.s32.totalorder %s775_s1, %s543_s11  ;;  %p547_p1 = scmp.lt.u32.totalorder %s543_s11, %s775_s1 }
   0x7   :  { %p549_p2 = pnand %p547_p1, %p544_p0 }
   0x9   :  { %552 = shalt.err (!%p549_p2)
}
   0xa   :  { %s553_s16 = scalar_lea.vmem %s34_s28, 128  ;;  %p558_p4 = scmp.lt.s32.totalorder %s34_s28, %s34_s28 }
   0xb   :  { %p554_p3 = scmp.ne.s32.totalorder %s34_s28, %s553_s16  ;;  %p559_p5 = scmp.lt.s32.totalorder %s553_s16, %s553_s16 }
   0xd   :  { %p560_p6 = por %p559_p5, %p558_p4 }
   0xf   :  { %p561_p7 = pnand %p560_p6, %p554_p3 }
  0x11   :  { %564 = shalt.err (!%p561_p7)
}
  0x12   :  { %36 = dma.hbm_to_vmem [thread:$0]  %s775_s1, 128, %s34_s28, [#allocation5]  }
  0x13   :  { %s565_s21 = scalar_lea.hbm %s774_s0, 128 }
  0x14   :  { %p566_p8 = scmp.ne.s32.totalorder %s774_s0, %s565_s21  ;;  %p569_p9 = scmp.lt.u32.totalorder %s565_s21, %s774_s0 }
  0x16   :  { %p571_p10 = pnand %p569_p9, %p566_p8 }
  0x18   :  { %574 = shalt.err (!%p571_p10)
}
  0x19   :  { %s575_s26 = scalar_lea.vmem %s24_s30, 128  ;;  %p580_p12 = scmp.lt.s32.totalorder %s24_s30, %s24_s30 }
  0x1a   :  { %p576_p11 = scmp.ne.s32.totalorder %s24_s30, %s575_s26  ;;  %p581_p13 = scmp.lt.s32.totalorder %s575_s26, %s575_s26 }
  0x1c   :  { %p582_p0 = por %p581_p13, %p580_p12 }
  0x1e   :  { %p583_p1 = pnand %p582_p0, %p576_p11 }
  0x20   :  { %586 = shalt.err (!%p583_p1)
}
  0x21   :  { %26 = dma.hbm_to_vmem [thread:$0]  %s774_s0, 128, %s24_s30, [#allocation3]  }
  0x22   :  { %s639_s28 = smov [#allocation6]   ;;  %s587_s11 = scalar_lea.hbm %s777_s3, 2048 }
  0x23   :  { %s44_s29 = sshll.u32 %s639_s28, 4  ;;  %p588_p2 = scmp.ne.s32.totalorder %s777_s3, %s587_s11  ;;  %s45_s29 = int_to_ptr.vmem [resolvable:$true] %s44_s29 }
  0x24   :  { %p591_p3 = scmp.lt.u32.totalorder %s587_s11, %s777_s3 }
  0x26   :  { %p593_p4 = pnand %p591_p3, %p588_p2 }
  0x28   :  { %596 = shalt.err (!%p593_p4)
}
  0x29   :  { %s597_s16 = scalar_lea.vmem %s45_s29, 2048  ;;  %p602_p6 = scmp.lt.s32.totalorder %s45_s29, %s45_s29 }
  0x2a   :  { %p598_p5 = scmp.ne.s32.totalorder %s45_s29, %s597_s16  ;;  %p603_p7 = scmp.lt.s32.totalorder %s597_s16, %s597_s16 }
  0x2c   :  { %p604_p8 = por %p603_p7, %p602_p6 }
  0x2e   :  { %p605_p9 = pnand %p604_p8, %p598_p5 }
  0x30   :  { %608 = shalt.err (!%p605_p9)
}
  0x31   :  { %s640_s0 = smov 128   ;;  %s641_s30 = smov 8  }
  0x32   :  { %50 = dma.hbm_to_vmem [thread:$0]  %s777_s3, 2048, %s45_s29, [#allocation5], %s640_s0, %s640_s0, %s641_s30  }
  0x33   :  { %s642_s19 = smov [#allocation7]   ;;  %s609_s23 = scalar_lea.hbm %s779_s5, 2048 }
  0x34   :  { %s58_s20 = sshll.u32 %s642_s19, 4  ;;  %p610_p10 = scmp.ne.s32.totalorder %s779_s5, %s609_s23  ;;  %s59_s20 = int_to_ptr.vmem [resolvable:$true] %s58_s20 }
  0x35   :  { %p613_p11 = scmp.lt.u32.totalorder %s609_s23, %s779_s5 }
  0x37   :  { %p615_p12 = pnand %p613_p11, %p610_p10 }
  0x39   :  { %618 = shalt.err (!%p615_p12)
}
  0x3a   :  { %s619_s27 = scalar_lea.vmem %s59_s20, 2048  ;;  %p624_p0 = scmp.lt.s32.totalorder %s59_s20, %s59_s20 }
  0x3b   :  { %p620_p13 = scmp.ne.s32.totalorder %s59_s20, %s619_s27  ;;  %p625_p1 = scmp.lt.s32.totalorder %s619_s27, %s619_s27 }
  0x3d   :  { %p626_p2 = por %p625_p1, %p624_p0 }
  0x3f   :  { %p627_p3 = pnand %p626_p2, %p620_p13 }
  0x41   :  { %630 = shalt.err (!%p627_p3)
}
  0x42   :  { %64 = dma.hbm_to_vmem [thread:$0]  %s779_s5, 2048, %s59_s20, [#allocation8], %s640_s0, %s640_s0, %s641_s30  }
  0x43   :  { %631 = dma.done.wait [#allocation3], 128  }
  0x44   :  { %632 = vsyncadd [#allocation3], 4294967168 }
  0x45   :  { %633 = dma.done.wait [#allocation5], 2176  }
  0x46   :  { %634 = vsyncadd [#allocation5], 4294965120 }
  0x47   :  { %635 = dma.done.wait [#allocation8], 2048  }
  0x48   :  { %636 = vsyncadd [#allocation8], 4294965248  ;;  %v643_v0 = vmov 0.0   ;;  %vm644_vm0 = vmmov 0   ;;  %v645_v1 = vmov 0.0|0.0   ;;  %vm88_vm1 = vcmask 64512  }
  0x49   :  { %410 = vmatprep.subr.mxu0 %v643_v0  ;;  %412 = vmatprep.mubr.msk.f32.mxu0 %vm644_vm0, %v643_v0  ;;  %v80_v2 = vld [vmem:[#allocation4] sm:$0xff]  ;;  %v79_v3 = vld [vmem:[#allocation2] sm:$0xff]  ;;  %v163_v4 = vld [vmem:[#allocation6] sm:$0xff]  ;;  %vm350_vm2 = vcmask 31744  }
  0x4a   :  { %485 = vmatprep.subr.bf16.mxu1 %v645_v1  ;;  %447 = vmatprep.mubr.msk.f32.mxu1 %vm644_vm0, %v643_v0  ;;  %v164_v5 = vld [vmem:[#allocation6 + $0x8] sm:$0xff]  ;;  %v165_v6 = vld [vmem:[#allocation6 + $0x10] sm:$0xff]  ;;  %v166_v7 = vld [vmem:[#allocation6 + $0x18] sm:$0xff] }
  0x4b   :  { %411 = vmatpush3.msra.mxu0 %v80_v2  ;;  %v486_v8 = vpack.c.bf16 %v164_v5, %v163_v4  ;;  %v489_v9 = vpack.c.bf16 %v166_v7, %v165_v6  ;;  %v167_v10 = vld [vmem:[#allocation6 + $0x20] sm:$0xff]  ;;  %v168_v11 = vld [vmem:[#allocation6 + $0x28] sm:$0xff]  ;;  %v169_v13 = vld [vmem:[#allocation6 + $0x30] sm:$0xff] }
  0x4c   :  { %413 = vmatmul.mubr.msk.f32.vlgmr.msra.gmra.mrb[0].mxu0 %vm88_vm1, %v79_v3  ;;  %509 = vmatprep.subr.bf16.mxu0 %v645_v1  ;;  %v492_v12 = vpack.c.bf16 %v168_v11, %v167_v10  ;;  %v170_v14 = vld [vmem:[#allocation6 + $0x38] sm:$0xff]  ;;  %v171_v16 = vld [vmem:[#allocation6 + $0x40] sm:$0xff]  ;;  %v172_v17 = vld [vmem:[#allocation6 + $0x48] sm:$0xff] }
  0x4d   :  { %482 = vmatprep.mubr.msk.f32.mxu0 %vm644_vm0, %v643_v0  ;;  %487 = vmatpush3.bf16.msra.mxu1 %v486_v8  ;;  %v495_v15 = vpack.c.bf16 %v170_v14, %v169_v13  ;;  %v498_v18 = vpack.c.bf16 %v172_v17, %v171_v16  ;;  %v173_v19 = vld [vmem:[#allocation6 + $0x50] sm:$0xff]  ;;  %v174_v20 = vld [vmem:[#allocation6 + $0x58] sm:$0xff]  ;;  %v175_v22 = vld [vmem:[#allocation6 + $0x60] sm:$0xff] }
  0x4e   :  { %488 = vmatprep.subr.bf16.mxu1 %v645_v1  ;;  %v501_v21 = vpack.c.bf16 %v174_v20, %v173_v19  ;;  %v176_v23 = vld [vmem:[#allocation6 + $0x68] sm:$0xff]  ;;  %v177_v25 = vld [vmem:[#allocation6 + $0x70] sm:$0xff]  ;;  %v178_v26 = vld [vmem:[#allocation6 + $0x78] sm:$0xff] }
  0x4f   :  { %v504_v24 = vpack.c.bf16 %v176_v23, %v175_v22  ;;  %v507_v27 = vpack.c.bf16 %v178_v26, %v177_v25  ;;  %v257_v28 = vld [vmem:[#allocation7] sm:$0xff]  ;;  %v258_v29 = vld [vmem:[#allocation7 + $0x8] sm:$0xff]  ;;  %v259_v30 = vld [vmem:[#allocation7 + $0x10] sm:$0xff] }
  0x50   :  { %v510_v31 = vpack.c.bf16 %v258_v29, %v257_v28  ;;  %v260_v32 = vld [vmem:[#allocation7 + $0x18] sm:$0xff]  ;;  %v261_v34 = vld [vmem:[#allocation7 + $0x20] sm:$0xff]  ;;  %v262_v35 = vld [vmem:[#allocation7 + $0x28] sm:$0xff] }
  0x51   :  { %490 = vmatpush3.bf16.msra.mxu1 %v489_v9  ;;  %v513_v33 = vpack.c.bf16 %v260_v32, %v259_v30  ;;  %v516_v36 = vpack.c.bf16 %v262_v35, %v261_v34  ;;  %v263_v37 = vld [vmem:[#allocation7 + $0x30] sm:$0xff]  ;;  %v264_v38 = vld [vmem:[#allocation7 + $0x38] sm:$0xff]  ;;  %v265_v40 = vld [vmem:[#allocation7 + $0x40] sm:$0xff] }
  0x52   :  { %491 = vmatprep.subr.bf16.mxu1 %v645_v1  ;;  %511 = vmatpush3.bf16.msra.mxu0 %v510_v31  ;;  %v519_v39 = vpack.c.bf16 %v264_v38, %v263_v37  ;;  %v266_v41 = vld [vmem:[#allocation7 + $0x48] sm:$0xff]  ;;  %v267_v43 = vld [vmem:[#allocation7 + $0x50] sm:$0xff]  ;;  %v268_v44 = vld [vmem:[#allocation7 + $0x58] sm:$0xff] }
  0x53   :  { %512 = vmatprep.subr.bf16.mxu0 %v645_v1  ;;  %v522_v42 = vpack.c.bf16 %v266_v41, %v265_v40  ;;  %v525_v45 = vpack.c.bf16 %v268_v44, %v267_v43  ;;  %v269_v46 = vld [vmem:[#allocation7 + $0x60] sm:$0xff]  ;;  %v270_v47 = vld [vmem:[#allocation7 + $0x68] sm:$0xff]  ;;  %v370_v49 = vld [vmem:[%s776_s2] ss:$0 sm:$0xff] }
  0x54   :  { %v528_v48 = vpack.c.bf16 %v270_v47, %v269_v46  ;;  %v271_v54 = vld [vmem:[#allocation7 + $0x70] sm:$0xff]  ;;  %v272_v55 = vld [vmem:[#allocation7 + $0x78] sm:$0xff] }
  0x55   :  { %493 = vmatpush3.bf16.msra.mxu1 %v492_v12  ;;  %v531_v56 = vpack.c.bf16 %v272_v55, %v271_v54  ;;  %v372_v57 = vld [vmem:[%s778_s4] ss:$0 sm:$0xff]  ;;  %s646_s4 = smov 124  }
  0x56   :  { %494 = vmatprep.subr.bf16.mxu1 %v645_v1  ;;  %514 = vmatpush3.bf16.msra.mxu0 %v513_v33  ;;  %v373_v62 = vld [vmem:[%s780_s6] ss:$0 sm:$0xff] }
  0x57   :  { %515 = vmatprep.subr.bf16.mxu0 %v645_v1 }
  0x59   :  { %496 = vmatpush3.bf16.msra.mxu1 %v495_v15 }
  0x5a   :  { %497 = vmatprep.subr.bf16.mxu1 %v645_v1  ;;  %517 = vmatpush3.bf16.msra.mxu0 %v516_v36 }
  0x5b   :  { %518 = vmatprep.subr.bf16.mxu0 %v645_v1 }
  0x5d   :  { %499 = vmatpush3.bf16.msra.mxu1 %v498_v18 }
  0x5e   :  { %500 = vmatprep.subr.bf16.mxu1 %v645_v1  ;;  %520 = vmatpush3.bf16.msra.mxu0 %v519_v39 }
  0x5f   :  { %521 = vmatprep.subr.bf16.mxu0 %v645_v1 }
  0x61   :  { %502 = vmatpush3.bf16.msra.mxu1 %v501_v21 }
  0x62   :  { %503 = vmatprep.subr.bf16.mxu1 %v645_v1  ;;  %523 = vmatpush3.bf16.msra.mxu0 %v522_v42 }
  0x63   :  { %524 = vmatprep.subr.bf16.mxu0 %v645_v1 }
  0x65   :  { %505 = vmatpush3.bf16.msra.mxu1 %v504_v24 }
  0x66   :  { %506 = vmatprep.subr.bf16.mxu1 %v645_v1  ;;  %526 = vmatpush3.bf16.msra.mxu0 %v525_v45 }
  0x67   :  { %527 = vmatprep.subr.bf16.mxu0 %v645_v1 }
  0x69   :  { %508 = vmatpush3.bf16.msra.mxu1 %v507_v27 }
  0x6a   :  { %529 = vmatpush3.bf16.msra.mxu0 %v528_v48 }
  0x6b   :  { %530 = vmatprep.subr.bf16.mxu0 %v645_v1 }
  0x6e   :  { %532 = vmatpush3.bf16.msra.mxu0 %v531_v56 }
 0x11f   :  { %v158_v50 = vpop.f32.mrb[0].mxu0 }
 0x120   :  { %v159_v51 = vadd.f32 %v370_v49, %v158_v50  ;;  %v414_v52 = vpop.f32.mrb[1].mxu0 }
 0x122   :  { %v162_v53 = vmax.f32 %v159_v51, 0.0 }
 0x124   :  { %448 = vmatmul.mubr.f32.vlgmr.msra.gmra.mrb[0].mxu1 %v162_v53 }
 0x1f7   :  { %v252_v58 = vpop.f32.mrb[0].mxu1 }
 0x1f8   :  { %v253_v59 = vadd.f32 %v372_v57, %v252_v58  ;;  %v449_v60 = vpop.f32.mrb[1].mxu1 }
 0x1fa   :  { %v256_v61 = vmax.f32 %v253_v59, 0.0 }
 0x1fc   :  { %483 = vmatmul.mubr.f32.vlgmr.msra.gmra.mrb[2].mxu0 %v256_v61 }
 0x2cf   :  { %v346_v63 = vpop.f32.mrb[2].mxu0 }
 0x2d0   :  { %v347_v0 = vadd.f32 %v373_v62, %v346_v63  ;;  %v484_v1 = vpop.f32.mrb[3].mxu0 }
 0x2d2   :  { %v352_v2 = vmax.f32 %v347_v0, -20.0  ;;  %351 = vst.msk [vmem:[%s781_s7] sm:$0xff] %vm350_vm2, %v347_v0 }
 0x2d4   :  { %v353_v3 = vmin.f32 %v352_v2, 2.0 }
 0x2d6   :  { %355 = vrot.lane.b32.xlu0 %v353_v3, %s646_s4 }
 0x348   :  { %v356_v4 = vpop.permute.xlu0 %355 }
 0x349   :  { %358 = vst.msk [vmem:[%s782_s8] sm:$0xff] %vm350_vm2, %v356_v4 }
 0x34a   :  { %367 = vsyncpa [#allocation3], 1 }
 0x34b   :  { %368 = vsyncpa [#allocation5], 1 }
 0x34c   :  { %369 = vsyncpa [#allocation8], 1 }

</bundles_post_ra>
